<compile_context>
chip_gen: v7x
topology: tpu7x:2x2x1
jax: 0.10.0
libtpu: 0.0.40
codegen_flags: <defaults>
</compile_context>

<pallas_src>
import functools
import math

import jax
import jax.numpy as jnp
from jax.experimental import pallas as pl
from jax.experimental.pallas import tpu as pltpu


_MIN_DMA_SEGMENT_BYTES = 8 * 1024   # target contiguous bytes per strided-DMA segment
_TARGET_GRID_STEPS = 8              # enough grid steps for pipelining + megacore


def _vmem_budgets():
    """(per-x-block budget bytes, scoped vmem_limit bytes), per chip generation."""
    cap = None
    try:
        cap = pltpu.get_tpu_info().vmem_capacity_bytes
    except Exception:
        cap = None
    if cap is None:
        cap = 64 * 1024 * 1024                       # assume smallest (v7x) if unknown
    if cap < 96 * 1024 * 1024:                       # v7x: 64 MiB / TensorCore
        return 4 * 1024 * 1024, 40 * 1024 * 1024
    return 12 * 1024 * 1024, 96 * 1024 * 1024        # v5e / v6e: 128 MiB


def _has_bf16_vpu():
    """v6e/v7x have bf16 VALUs; v5e (and older) do not."""
    try:
        kind = jax.devices()[0].device_kind.lower()
    except Exception:
        return False
    return any(t in kind for t in ("v6", "v7", "tpu7"))


def _sublane_pack(dtype):
    """Native sublane packing multiple: 8 (f32), 16 (bf16/f16), 32 (int8/fp8)."""
    itemsize = jnp.dtype(dtype).itemsize
    return 8 * max(1, 4 // itemsize)


def _choose_tile_c(C, spatial, itemsize, N, pack, block_budget_bytes):
    """Channel tile: divisor of C, multiple of `pack` (or == C), under budget,
    preferring many grid steps and >= 8 KiB contiguous DMA segments."""
    per_channel_block = N * spatial * itemsize
    cands = [d for d in range(1, C + 1)
             if C % d == 0 and (d % pack == 0 or d == C)]
    fits = [d for d in cands if d * per_channel_block <= block_budget_bytes]
    if not fits:
        return None   # caller falls back to the two-pass (spatially tiled) path

    def seg_ok(d):    # contiguous HBM bytes per (sample, channel-tile) segment
        return d * spatial * itemsize >= _MIN_DMA_SEGMENT_BYTES

    for pred in (lambda d: C // d >= _TARGET_GRID_STEPS and seg_ok(d),
                 lambda d: C // d >= 2 and seg_ok(d),
                 lambda d: C // d >= 2):
        ok = [d for d in fits if pred(d)]
        if ok:
            return max(ok)
    return max(fits)


# --------------------------------------------------------------------------
# Fused single-pass kernel: stats + running-stat update + normalize per tile.
# --------------------------------------------------------------------------
def _accbn_fused_kernel(x_ref, rm_ref, rv_ref, y_ref, nrm_ref, nrv_ref, *,
                        momentum, eps, training, inv_count, n_batch,
                        bf16_normalize):
    # x_ref : (N, tile_c, HW)  native-layout channel tile (lane axis = HW)
    # rm_ref: (tile_c, 1)      running_mean slice (f32)
    # rv_ref: (tile_c, 1)      running_var  slice (f32)
    rm = rm_ref[...]
    rv = rv_ref[...]

    if training and momentum > 0:
        tile_c, hw = x_ref.shape[1], x_ref.shape[2]

        # Batch-first accumulation (VPU): one f32 (tile_c, HW) slab pair,
        # then a single cross-lane (XLU) reduce at the end.
        def body(n, carry):
            acc_s, acc_q = carry
            xn = x_ref[n].astype(jnp.float32)          # f32 before squaring
            return acc_s + xn, acc_q + xn * xn

        zeros = jnp.zeros((tile_c, hw), jnp.float32)
        acc_s, acc_q = jax.lax.fori_loop(0, n_batch, body, (zeros, zeros),
                                         unroll=n_batch <= 8)
        mean = jnp.sum(acc_s, axis=-1, keepdims=True) * inv_count   # (tile_c, 1)
        ex2 = jnp.sum(acc_q, axis=-1, keepdims=True) * inv_count    # (tile_c, 1)
        var = jnp.maximum(ex2 - mean * mean, 0.0)      # clamp rounding negatives
        new_rm = (1.0 - momentum) * rm + momentum * mean
        new_rv = (1.0 - momentum) * rv + momentum * var
    else:
        new_rm = rm
        new_rv = rv

    scale = jax.lax.rsqrt(new_rv + eps)                # (tile_c, 1) f32, EUP
    bias = -new_rm * scale                             # y = x*scale + bias
    x = x_ref[...]
    if bf16_normalize:
        y = x * scale[None].astype(x.dtype) + bias[None].astype(x.dtype)
    else:
        y = x * scale[None] + bias[None]
    y_ref[...] = y.astype(y_ref.dtype)
    nrm_ref[...] = new_rm
    nrv_ref[...] = new_rv


# --------------------------------------------------------------------------
# Two-pass fallback (per-channel block too big for VMEM): stats kernel with a
# spatial/batch reduction grid, then an elementwise normalize kernel.
# --------------------------------------------------------------------------
def _stats_kernel(x_ref, sum_ref, sq_ref, acc_s, acc_q):
    n = pl.program_id(1)
    s = pl.program_id(2)

    @pl.when((n == 0) & (s == 0))
    def _():
        acc_s[...] = jnp.zeros_like(acc_s)
        acc_q[...] = jnp.zeros_like(acc_q)

    xf = x_ref[0].astype(jnp.float32)                  # (tile_c, tile_s)
    acc_s[...] += jnp.sum(xf, axis=-1, keepdims=True)
    acc_q[...] += jnp.sum(xf * xf, axis=-1, keepdims=True)

    @pl.when((n == pl.num_programs(1) - 1) & (s == pl.num_programs(2) - 1))
    def _():
        sum_ref[...] = acc_s[...]
        sq_ref[...] = acc_q[...]


def _normalize_kernel(x_ref, scale_ref, bias_ref, y_ref, *, bf16_normalize):
    x = x_ref[...]
    scale = scale_ref[...][None]
    bias = bias_ref[...][None]
    if bf16_normalize:
        scale = scale.astype(x.dtype)
        bias = bias.astype(x.dtype)
    y_ref[...] = (x * scale + bias).astype(y_ref.dtype)


def _two_pass(x3, rm2, rv2, *, momentum, eps, training, tile_c, tile_s,
              inv_count, bf16_norm, vmem_limit):
    N, C, spatial = x3.shape
    grid = (C // tile_c, N, spatial // tile_s)

    if training and momentum > 0:
        sums, sqs = pl.pallas_call(
            _stats_kernel,
            out_shape=(jax.ShapeDtypeStruct((C, 1), jnp.float32),
                       jax.ShapeDtypeStruct((C, 1), jnp.float32)),
            grid=grid,
            in_specs=[pl.BlockSpec((1, tile_c, tile_s), lambda c, n, s: (n, c, s))],
            out_specs=(pl.BlockSpec((tile_c, 1), lambda c, n, s: (c, 0)),
                       pl.BlockSpec((tile_c, 1), lambda c, n, s: (c, 0))),
            scratch_shapes=[pltpu.VMEM((tile_c, 1), jnp.float32),
                            pltpu.VMEM((tile_c, 1), jnp.float32)],
            compiler_params=pltpu.CompilerParams(
                dimension_semantics=("parallel", "arbitrary", "arbitrary"),
                vmem_limit_bytes=vmem_limit),
        )(x3)
        mean = sums * inv_count                        # O(C) glue, negligible
        var = jnp.maximum(sqs * inv_count - mean * mean, 0.0)
        new_rm = (1.0 - momentum) * rm2 + momentum * mean
        new_rv = (1.0 - momentum) * rv2 + momentum * var
    else:
        new_rm, new_rv = rm2, rv2

    scale = jax.lax.rsqrt(new_rv + eps)
    bias = -new_rm * scale

    kernel = functools.partial(_normalize_kernel, bf16_normalize=bf16_norm)
    y3 = pl.pallas_call(
        kernel,
        out_shape=jax.ShapeDtypeStruct((N, C, spatial), x3.dtype),
        grid=grid,
        in_specs=[pl.BlockSpec((1, tile_c, tile_s), lambda c, n, s: (n, c, s)),
                  pl.BlockSpec((tile_c, 1), lambda c, n, s: (c, 0)),
                  pl.BlockSpec((tile_c, 1), lambda c, n, s: (c, 0))],
        out_specs=pl.BlockSpec((1, tile_c, tile_s), lambda c, n, s: (n, c, s)),
        compiler_params=pltpu.CompilerParams(
            dimension_semantics=("parallel", "parallel", "parallel"),
            vmem_limit_bytes=vmem_limit),
    )(x3, scale, bias)
    return y3, new_rm, new_rv


# --------------------------------------------------------------------------
# Public wrapper.
# --------------------------------------------------------------------------
def acc_batch_norm(x, running_mean, running_var, *, momentum=0.1, eps=1e-5,
                   training=True, block_budget_bytes=None):
    """x: [N, C, ...] (e.g. NCHW). Returns (y, new_running_mean, new_running_var)."""
    N, C = x.shape[0], x.shape[1]
    spatial = math.prod(x.shape[2:]) if x.ndim > 2 else 1

    x3 = x.reshape(N, C, spatial)                       # free view, NO transpose
    rm2 = running_mean.reshape(C, 1).astype(jnp.float32)
    rv2 = running_var.reshape(C, 1).astype(jnp.float32)

    budget, vmem_limit = _vmem_budgets()
    if block_budget_bytes is not None:
        budget = block_budget_bytes

    itemsize = jnp.dtype(x.dtype).itemsize
    pack = _sublane_pack(x.dtype)
    bf16_norm = (x.dtype == jnp.bfloat16) and _has_bf16_vpu()
    inv_count = 1.0 / float(N * spatial)

    tile_c = _choose_tile_c(C, spatial, itemsize, N, pack, budget)

    if tile_c is None:
        # Per-channel block does not fit VMEM -> two-pass spatially-tiled path.
        cands = [d for d in range(1, C + 1)
                 if C % d == 0 and (d % pack == 0 or d == C)]
        tc = min(cands)
        s_cands = [d for d in range(1, spatial + 1)
                   if spatial % d == 0 and (d % 128 == 0 or d == spatial)]
        s_fits = [d for d in s_cands if tc * d * itemsize <= budget]
        ts = max(s_fits) if s_fits else min(s_cands)
        # TODO(synk): if even the smallest legal spatial tile blows the budget
        # (huge prime spatial extent), a BoundedSlice/Element-tiled DMA is needed.
        y3, new_rm, new_rv = _two_pass(
            x3, rm2, rv2, momentum=momentum, eps=eps, training=training,
            tile_c=tc, tile_s=ts, inv_count=inv_count,
            bf16_norm=bf16_norm, vmem_limit=vmem_limit)
        return y3.reshape(x.shape), new_rm.reshape(C), new_rv.reshape(C)

    grid = (C // tile_c,)
    kernel = functools.partial(
        _accbn_fused_kernel, momentum=momentum, eps=eps, training=training,
        inv_count=inv_count, n_batch=N, bf16_normalize=bf16_norm)

    y3, new_rm, new_rv = pl.pallas_call(
        kernel,
        out_shape=(
            jax.ShapeDtypeStruct((N, C, spatial), x.dtype),
            jax.ShapeDtypeStruct((C, 1), jnp.float32),
            jax.ShapeDtypeStruct((C, 1), jnp.float32),
        ),
        grid=grid,
        in_specs=[
            pl.BlockSpec((N, tile_c, spatial), lambda c: (0, c, 0)),
            pl.BlockSpec((tile_c, 1), lambda c: (c, 0)),
            pl.BlockSpec((tile_c, 1), lambda c: (c, 0)),
        ],
        out_specs=(
            pl.BlockSpec((N, tile_c, spatial), lambda c: (0, c, 0)),
            pl.BlockSpec((tile_c, 1), lambda c: (c, 0)),
            pl.BlockSpec((tile_c, 1), lambda c: (c, 0)),
        ),
        compiler_params=pltpu.CompilerParams(
            dimension_semantics=("parallel",),
            vmem_limit_bytes=vmem_limit,
        ),
    )(x3, rm2, rv2)

    return y3.reshape(x.shape), new_rm.reshape(C), new_rv.reshape(C)


# --------------------------------------------------------------------------
# Reference + checks.
# --------------------------------------------------------------------------
def _reference(x, running_mean, running_var, momentum, eps, training=True):
    N, C = x.shape[0], x.shape[1]
    xf = x.astype(jnp.float32).reshape(N, C, -1)
    rm = running_mean.astype(jnp.float32)
    rv = running_var.astype(jnp.float32)
    if training and momentum > 0:
        mean = xf.mean(-1).mean(0)
        x2 = (xf ** 2).mean(-1).mean(0)
        var = x2 - mean ** 2
        rm = (1 - momentum) * rm + momentum * mean
        rv = (1 - momentum) * rv + momentum * var
    shape = (1, C) + (1,) * (x.ndim - 2)
    y = (x.astype(jnp.float32) - rm.reshape(shape)) * (1.0 / (rv + eps) ** 0.5).reshape(shape)
    return y.astype(x.dtype), rm, rv


def _check(x, momentum=0.1, eps=1e-5, training=True,
           atol=1e-4, rtol=1e-4, stats_tol=1e-4, **kw):
    C = x.shape[1]
    running_mean = jnp.zeros((C,), jnp.float32)
    running_var = jnp.ones((C,), jnp.float32)
    y, new_rm, new_rv = acc_batch_norm(x, running_mean, running_var,
                                       momentum=momentum, eps=eps,
                                       training=training, **kw)
    jax.block_until_ready(y)
    y_ref, rm_ref, rv_ref = _reference(x, running_mean, running_var, momentum, eps, training)
    assert jnp.allclose(y.astype(jnp.float32), y_ref.astype(jnp.float32),
                        atol=atol, rtol=rtol), "output mismatch"
    assert jnp.allclose(new_rm, rm_ref, atol=stats_tol, rtol=stats_tol), "running_mean mismatch"
    assert jnp.allclose(new_rv, rv_ref, atol=stats_tol, rtol=stats_tol), "running_var mismatch"


if __name__ == "__main__":
    key = jax.random.PRNGKey(0)
    k1, k2, k3 = jax.random.split(key, 3)

    # Main case: buffers as in __init__ (running_mean=0, running_var=1), training mode.
    x = jax.random.normal(k1, (2, 4, 16, 16), dtype=jnp.float32) * 2.0 + 0.5
    _check(x, momentum=0.1, eps=1e-5, training=True)

    # C > 8 path (multi-tile channel grid) + eval-mode path.
    x2 = jax.random.normal(k2, (2, 16, 8, 8), dtype=jnp.float32) * 1.5 - 0.25
    _check(x2, momentum=0.1, eps=1e-5, training=True)
    _check(x2, momentum=0.1, eps=1e-5, training=False)

    # Force the two-pass fallback (tiny block budget) to validate that path.
    _check(x2, momentum=0.1, eps=1e-5, training=True, block_budget_bytes=2048)

    # bf16 path: exercises 16-row sublane packing (+ bf16 normalize on v6e/v7x).
    xb = (jax.random.normal(k3, (2, 32, 8, 8), dtype=jnp.float32) * 1.2 + 0.3
          ).astype(jnp.bfloat16)
    _check(xb, momentum=0.1, eps=1e-5, training=True, atol=1e-1, rtol=1e-1)

    print("KERNEL_OK")
</pallas_src>

<mosaic_0001>
module attributes {stable_mosaic.version = 11 : i64} {
  func.func @_accbn_fused_kernel(%arg0: i32, %arg1: memref<2x4x256xf32, #tpu.memory_space<vmem>>, %arg2: memref<4x1xf32, #tpu.memory_space<vmem>>, %arg3: memref<4x1xf32, #tpu.memory_space<vmem>>, %arg4: memref<2x4x256xf32, #tpu.memory_space<vmem>>, %arg5: memref<4x1xf32, #tpu.memory_space<vmem>>, %arg6: memref<4x1xf32, #tpu.memory_space<vmem>>) attributes {dimension_semantics = [#tpu.dimension_semantics<parallel>], iteration_bounds = array<i64: 1>, scalar_prefetch = 0 : i64, scratch_operands = 0 : i64, tpu.core_type = #tpu.core_type<tc>, window_params = [{transform_indices = @transform_0, window_bounds = array<i64: 2, 4, 256>}, {transform_indices = @transform_1, window_bounds = array<i64: 4, 1>}, {transform_indices = @transform_2, window_bounds = array<i64: 4, 1>}, {transform_indices = @transform_3, window_bounds = array<i64: 2, 4, 256>}, {transform_indices = @transform_4, window_bounds = array<i64: 4, 1>}, {transform_indices = @transform_5, window_bounds = array<i64: 4, 1>}]} {
    %c0 = arith.constant 0 : index
    %c0_0 = arith.constant 0 : index
    %0 = vector.load %arg2[%c0, %c0_0] : memref<4x1xf32, #tpu.memory_space<vmem>>, vector<4x1xf32>
    %c0_1 = arith.constant 0 : index
    %c0_2 = arith.constant 0 : index
    %1 = vector.load %arg3[%c0_1, %c0_2] : memref<4x1xf32, #tpu.memory_space<vmem>>, vector<4x1xf32>
    %cst = arith.constant 0.000000e+00 : f32
    %2 = vector.broadcast %cst : f32 to vector<4x256xf32>
    %c0_i32 = arith.constant 0 : i32
    %3 = arith.index_cast %c0_i32 : i32 to index
    %c0_3 = arith.constant 0 : index
    %c0_4 = arith.constant 0 : index
    %4 = vector.load %arg1[%3, %c0_3, %c0_4] : memref<2x4x256xf32, #tpu.memory_space<vmem>>, vector<1x4x256xf32>
    %5 = vector.shape_cast %4 : vector<1x4x256xf32> to vector<4x256xf32>
    %6 = arith.addf %2, %5 : vector<4x256xf32>
    %7 = arith.mulf %5, %5 : vector<4x256xf32>
    %8 = arith.addf %2, %7 : vector<4x256xf32>
    %c1_i32 = arith.constant 1 : i32
    %9 = arith.index_cast %c1_i32 : i32 to index
    %c0_5 = arith.constant 0 : index
    %c0_6 = arith.constant 0 : index
    %10 = vector.load %arg1[%9, %c0_5, %c0_6] : memref<2x4x256xf32, #tpu.memory_space<vmem>>, vector<1x4x256xf32>
    %11 = vector.shape_cast %10 : vector<1x4x256xf32> to vector<4x256xf32>
    %12 = arith.addf %6, %11 : vector<4x256xf32>
    %13 = arith.mulf %11, %11 : vector<4x256xf32>
    %14 = arith.addf %8, %13 : vector<4x256xf32>
    %c2_i32 = arith.constant 2 : i32
    %cst_7 = arith.constant dense<0.000000e+00> : vector<4xf32>
    %15 = vector.multi_reduction <add>, %12, %cst_7 [1] : vector<4x256xf32> to vector<4xf32>
    %16 = vector.shape_cast %15 : vector<4xf32> to vector<4x1xf32>
    %cst_8 = arith.constant 0.001953125 : f32
    %17 = vector.broadcast %cst_8 : f32 to vector<4x1xf32>
    %18 = arith.mulf %16, %17 : vector<4x1xf32>
    %cst_9 = arith.constant dense<0.000000e+00> : vector<4xf32>
    %19 = vector.multi_reduction <add>, %14, %cst_9 [1] : vector<4x256xf32> to vector<4xf32>
    %20 = vector.shape_cast %19 : vector<4xf32> to vector<4x1xf32>
    %cst_10 = arith.constant 0.001953125 : f32
    %21 = vector.broadcast %cst_10 : f32 to vector<4x1xf32>
    %22 = arith.mulf %20, %21 : vector<4x1xf32>
    %23 = arith.mulf %18, %18 : vector<4x1xf32>
    %24 = arith.subf %22, %23 : vector<4x1xf32>
    %cst_11 = arith.constant 0.000000e+00 : f32
    %25 = vector.broadcast %cst_11 : f32 to vector<4x1xf32>
    %26 = arith.maximumf %24, %25 : vector<4x1xf32>
    %cst_12 = arith.constant 0.899999976 : f32
    %27 = vector.broadcast %cst_12 : f32 to vector<4x1xf32>
    %28 = arith.mulf %27, %0 : vector<4x1xf32>
    %cst_13 = arith.constant 1.000000e-01 : f32
    %29 = vector.broadcast %cst_13 : f32 to vector<4x1xf32>
    %30 = arith.mulf %29, %18 : vector<4x1xf32>
    %31 = arith.addf %28, %30 : vector<4x1xf32>
    %cst_14 = arith.constant 0.899999976 : f32
    %32 = vector.broadcast %cst_14 : f32 to vector<4x1xf32>
    %33 = arith.mulf %32, %1 : vector<4x1xf32>
    %cst_15 = arith.constant 1.000000e-01 : f32
    %34 = vector.broadcast %cst_15 : f32 to vector<4x1xf32>
    %35 = arith.mulf %34, %26 : vector<4x1xf32>
    %36 = arith.addf %33, %35 : vector<4x1xf32>
    %cst_16 = arith.constant 9.99999974E-6 : f32
    %37 = vector.broadcast %cst_16 : f32 to vector<4x1xf32>
    %38 = arith.addf %36, %37 : vector<4x1xf32>
    %39 = math.rsqrt %38 : vector<4x1xf32>
    %cst_17 = arith.constant 0.000000e+00 : f32
    %40 = vector.broadcast %cst_17 : f32 to vector<4x1xf32>
    %41 = arith.subf %40, %31 : vector<4x1xf32>
    %42 = arith.mulf %41, %39 : vector<4x1xf32>
    %c0_18 = arith.constant 0 : index
    %c0_19 = arith.constant 0 : index
    %c0_20 = arith.constant 0 : index
    %43 = vector.load %arg1[%c0_18, %c0_19, %c0_20] : memref<2x4x256xf32, #tpu.memory_space<vmem>>, vector<2x4x256xf32>
    %44 = vector.shape_cast %39 : vector<4x1xf32> to vector<1x4x1xf32>
    %45 = vector.broadcast %44 : vector<1x4x1xf32> to vector<2x4x256xf32>
    %46 = arith.mulf %43, %45 : vector<2x4x256xf32>
    %47 = vector.shape_cast %42 : vector<4x1xf32> to vector<1x4x1xf32>
    %48 = vector.broadcast %47 : vector<1x4x1xf32> to vector<2x4x256xf32>
    %49 = arith.addf %46, %48 : vector<2x4x256xf32>
    %c0_21 = arith.constant 0 : index
    %c0_22 = arith.constant 0 : index
    %c0_23 = arith.constant 0 : index
    %50 = vector.load %arg4[%c0_21, %c0_22, %c0_23] : memref<2x4x256xf32, #tpu.memory_space<vmem>>, vector<2x4x256xf32>
    tpu.vector_store %arg4[%c0_21, %c0_22, %c0_23], %49 {strides = array<i32>} : memref<2x4x256xf32, #tpu.memory_space<vmem>>, vector<2x4x256xf32>,
    %c0_24 = arith.constant 0 : index
    %c0_25 = arith.constant 0 : index
    %51 = vector.load %arg5[%c0_24, %c0_25] : memref<4x1xf32, #tpu.memory_space<vmem>>, vector<4x1xf32>
    tpu.vector_store %arg5[%c0_24, %c0_25], %31 {strides = array<i32>} : memref<4x1xf32, #tpu.memory_space<vmem>>, vector<4x1xf32>,
    %c0_26 = arith.constant 0 : index
    %c0_27 = arith.constant 0 : index
    %52 = vector.load %arg6[%c0_26, %c0_27] : memref<4x1xf32, #tpu.memory_space<vmem>>, vector<4x1xf32>
    tpu.vector_store %arg6[%c0_26, %c0_27], %36 {strides = array<i32>} : memref<4x1xf32, #tpu.memory_space<vmem>>, vector<4x1xf32>,
    return
  }
  func.func @transform_0(%arg0: i32) -> (i32, i32, i32) {
    %c0_i32 = arith.constant 0 : i32
    %c0_i32_0 = arith.constant 0 : i32
    %c0_i32_1 = arith.constant 0 : i32
    return %c0_i32, %arg0, %c0_i32_0 : i32, i32, i32
  }
  func.func @transform_1(%arg0: i32) -> (i32, i32) {
    %c0_i32 = arith.constant 0 : i32
    %c0_i32_0 = arith.constant 0 : i32
    return %arg0, %c0_i32 : i32, i32
  }
  func.func @transform_2(%arg0: i32) -> (i32, i32) {
    %c0_i32 = arith.constant 0 : i32
    %c0_i32_0 = arith.constant 0 : i32
    return %arg0, %c0_i32 : i32, i32
  }
  func.func @transform_3(%arg0: i32) -> (i32, i32, i32) {
    %c0_i32 = arith.constant 0 : i32
    %c0_i32_0 = arith.constant 0 : i32
    %c0_i32_1 = arith.constant 0 : i32
    return %c0_i32, %arg0, %c0_i32_0 : i32, i32, i32
  }
  func.func @transform_4(%arg0: i32) -> (i32, i32) {
    %c0_i32 = arith.constant 0 : i32
    %c0_i32_0 = arith.constant 0 : i32
    return %arg0, %c0_i32 : i32, i32
  }
  func.func @transform_5(%arg0: i32) -> (i32, i32) {
    %c0_i32 = arith.constant 0 : i32
    %c0_i32_0 = arith.constant 0 : i32
    return %arg0, %c0_i32 : i32, i32
  }
}

</mosaic_0001>

<bundles_post_ra>
// kernel: tpu_custom_call.1
= control target key start
LH: loop header
LB: loop body
LE: loop exit
PB: predicated region body
PF: predicated region fallthrough
CT: control target
= control target key end

     0   :  { %11 = vsyncpa [#allocation3], 0  ;;  %s271_s0 = inlined_call_operand.hbm [shape: f32[2,4,256], index: 0, kind: input, shape index: {}]   ;;  %s272_s1 = inlined_call_operand.vmem [shape: f32[4,1], index: 1, kind: input, shape index: {}]   ;;  %s273_s2 = inlined_call_operand.vmem [shape: f32[4,1], index: 2, kind: input, shape index: {}]   ;;  %s274_s3 = inlined_call_operand.hbm [shape: f32[2,4,256], index: 3, kind: output, shape index: {0}]   ;;  %s275_s4 = inlined_call_operand.vmem [shape: f32[4,1], index: 4, kind: output, shape index: {1}]   ;;  %s276_s5 = inlined_call_operand.vmem [shape: f32[4,1], index: 5, kind: output, shape index: {2}]  }
   0x1   :  { %12 = vsyncpa [#allocation4], 0  ;;  %s193_s18 = smov [#allocation2]   ;;  %s145_s22 = scalar_lea.hbm %s271_s0, 256 }
   0x2   :  { %s18_s19 = sshll.u32 %s193_s18, 4  ;;  %p146_p0 = scmp.ne.s32.totalorder %s271_s0, %s145_s22  ;;  %s19_s19 = int_to_ptr.vmem [resolvable:$true] %s18_s19 }
   0x3   :  { %p149_p1 = scmp.lt.u32.totalorder %s145_s22, %s271_s0 }
   0x5   :  { %p151_p2 = pnand %p149_p1, %p146_p0 }
   0x7   :  { %154 = shalt.err (!%p151_p2)
}
   0x8   :  { %s155_s27 = scalar_lea.vmem %s19_s19, 256  ;;  %p160_p4 = scmp.lt.s32.totalorder %s19_s19, %s19_s19 }
   0x9   :  { %p156_p3 = scmp.ne.s32.totalorder %s19_s19, %s155_s27  ;;  %p161_p5 = scmp.lt.s32.totalorder %s155_s27, %s155_s27 }
   0xb   :  { %p162_p6 = por %p161_p5, %p160_p4 }
   0xd   :  { %p163_p7 = pnand %p162_p6, %p156_p3 }
   0xf   :  { %166 = shalt.err (!%p163_p7)
}
  0x10   :  { %s194_s28 = smov 128   ;;  %s195_s29 = smov 8  }
  0x11   :  { %24 = dma.hbm_to_vmem [thread:$0]  %s271_s0, 256, %s19_s19, [#allocation3], %s194_s28, %s194_s28, %s195_s29  }
  0x12   :  { %189 = dma.done.wait [#allocation3], 256  }
  0x13   :  { %190 = vsyncadd [#allocation3], 4294967040  ;;  %v34_v0 = vld [vmem:[#allocation2] sm:$0xff]  ;;  %v39_v1 = vld [vmem:[#allocation2 + $0x8] sm:$0xff]  ;;  %vm46_vm0 = vcmask 1043456   ;;  %v196_v14 = vmov 0   ;;  %v84_v36 = vlaneseq }
  0x14   :  { %v40_v2 = vadd.f32 %v39_v1, %v34_v0  ;;  %v41_v3 = vmul.f32 %v39_v1, %v39_v1  ;;  %v36_v4 = vmul.f32 %v34_v0, %v34_v0  ;;  %141 = vset.pattern.permute.xlu1 %v196_v14  ;;  %142 = vset.pattern.permute.xlu0 %v196_v14  ;;  %v32_v15 = vld [vmem:[%s272_s1] sm:$0xf]  ;;  %vm107_vm1 = vcmask 3072  }
  0x15   :  { %v65_v18 = vmul.f32 0.9, %v32_v15  ;;  %v33_v24 = vld [vmem:[%s273_s2] sm:$0xf]  ;;  %v197_v34 = vmov 839922192  }
  0x16   :  { %v44_v5 = vcombine.high %v40_v2, %v40_v2  ;;  %v47_v6 = vsel %vm46_vm0, %v40_v2, 0.0  ;;  %v42_v7 = vadd.f32 %v41_v3, %v36_v4  ;;  %v68_v27 = vmul.f32 0.9, %v33_v24  ;;  %s198_s2 = smov [#allocation5]  }
  0x17   :  { %v82_v35 = vunpack.c.l.s4 %v197_v34  ;;  %v85_v38 = vshrl.u32 %v84_v36, 7 }
  0x18   :  { %v48_v8 = vsel %vm46_vm0, %v44_v5, 0.0  ;;  %v54_v9 = vcombine.high %v42_v7, %v42_v7  ;;  %v56_v10 = vsel %vm46_vm0, %v42_v7, 0.0 }
  0x19   :  { %v49_v11 = vadd.f32 %v48_v8, %v47_v6  ;;  %v83_v37 = vunpack.c.0.s8 %v82_v35 }
  0x1a   :  { %v57_v12 = vsel %vm46_vm0, %v54_v9, 0.0 }
  0x1b   :  { %50 = vadd.xlane.f32.xlu0 %v49_v11  ;;  %v58_v13 = vadd.f32 %v57_v12, %v56_v10  ;;  %v86_v39 = vsub.s32 %v83_v37, %v85_v38 }
  0x1f   :  { %59 = vadd.xlane.f32.xlu0 %v58_v13 }
  0xa8   :  { %v51_v16 = vpop.xlane.xlu0 %50 }
  0xa9   :  { %v52_v17 = vmul.f32 0.001953125, %v51_v16 }
  0xab   :  { %v66_v19 = vmul.f32 0.1, %v52_v17  ;;  %v62_v21 = vmul.f32 %v52_v17, %v52_v17 }
  0xac   :  { %v60_v20 = vpop.xlane.xlu0 %59 }
  0xad   :  { %v67_v22 = vadd.f32 %v66_v19, %v65_v18  ;;  %v61_v23 = vmul.f32 0.001953125, %v60_v20 }
  0xaf   :  { %108 = vst.msk [vmem:[%s275_s4] sm:$0xf] %vm107_vm1, %v67_v22  ;;  %v63_v25 = vsub.f32 %v61_v23, %v62_v21  ;;  %v73_v32 = vsub.f32 0.0, %v67_v22  ;;  %s115_s4 = sshll.u32 %s198_s2, 4  ;;  %s116_s4 = int_to_ptr.vmem [resolvable:$true] %s115_s4 }
  0xb0   :  { %p172_p9 = scmp.lt.s32.totalorder %s116_s4, %s116_s4 }
  0xb1   :  { %v64_v26 = vmax.f32 %v63_v25, 0.0 }
  0xb3   :  { %v69_v28 = vmul.f32 0.1, %v64_v26 }
  0xb5   :  { %v70_v29 = vadd.f32 %v69_v28, %v68_v27 }
  0xb7   :  { %v71_v30 = vadd.f32 1e-05, %v70_v29  ;;  %109 = vst.msk [vmem:[%s276_s5] sm:$0xf] %vm107_vm1, %v70_v29  ;;  %s167_s5 = scalar_lea.vmem %s116_s4, 256 }
  0xb8   :  { %p168_p8 = scmp.ne.s32.totalorder %s116_s4, %s167_s5  ;;  %p173_p10 = scmp.lt.s32.totalorder %s167_s5, %s167_s5 }
  0xb9   :  { %143 = vrsqrt.f32 %v71_v30 }
  0xba   :  { %p174_p11 = por %p173_p10, %p172_p9 }
  0xbc   :  { %p175_p12 = pnand %p174_p11, %p168_p8 }
  0xc3   :  { %v144_v31 = vpop.eup %143 }
  0xc4   :  { %79 = vperm.xlu1 %141, %v144_v31   ;;  %v74_v33 = vmul.f32 %v144_v31, %v73_v32 }
  0xc8   :  { %93 = vperm.xlu1 %141, %v74_v33  }
 0x143   :  { %v80_v40 = vpop.permute.xlu1 %79 }
 0x144   :  { %v87_v41 = vrot.slane %v80_v40, %v86_v39 }
 0x146   :  { %v89_v43 = vmul.f32 %v87_v41, %v34_v0  ;;  %v90_v44 = vmul.f32 %v87_v41, %v39_v1 }
 0x147   :  { %v94_v42 = vpop.permute.xlu1 %93 }
 0x148   :  { %v101_v45 = vrot.slane %v94_v42, %v86_v39 }
 0x14a   :  { %v103_v46 = vadd.f32 %v101_v45, %v89_v43  ;;  %v104_v47 = vadd.f32 %v101_v45, %v90_v44 }
 0x14c   :  { %105 = vst [vmem:[#allocation5] sm:$0xff] %v103_v46  ;;  %106 = vst [vmem:[#allocation5 + $0x8] sm:$0xff] %v104_v47 }
 0x14d   :  { %178 = shalt.err (!%p175_p12)
}
 0x14e   :  { %s179_s15 = scalar_lea.hbm %s274_s3, 256 }
 0x14f   :  { %p180_p13 = scmp.ne.s32.totalorder %s274_s3, %s179_s15  ;;  %p183_p0 = scmp.lt.u32.totalorder %s179_s15, %s274_s3 }
 0x151   :  { %p185_p1 = pnand %p183_p0, %p180_p13 }
 0x153   :  { %188 = shalt.err (!%p185_p1)
}
 0x154   :  { %121 = dma.vmem_to_hbm [thread:$0]  %s116_s4, 256, %s274_s3, [#allocation4], %s194_s28, %s194_s28, %s195_s29  }
 0x155   :  { %191 = dma.done.wait [#allocation4], 256  }
 0x156   :  { %192 = vsyncadd [#allocation4], 4294967040 }
 0x157   :  { %133 = vsyncpa [#allocation3], 1 }
 0x158   :  { %134 = vsyncpa [#allocation4], 1 }

</bundles_post_ra>
